<compile_context>
chip_gen: v7x
topology: tpu7x:2x2x1
jax: 0.10.0
libtpu: 0.0.40
codegen_flags: <defaults>
</compile_context>

<pallas_src>
import jax
import jax.numpy as jnp
from jax.experimental import pallas as pl
from jax.experimental.pallas import tpu as pltpu


def predictor_kernel(x_ref, w1_ref, b1_ref, w2t_ref, b2_ref, o_ref):
    # hidden = relu(x @ w1 + b1)           (MXU + VPU)
    h = jnp.dot(x_ref[...], w1_ref[...], preferred_element_type=jnp.float32)
    h = jnp.maximum(h + b1_ref[...], 0.0)
    # out = h @ w2 + b2, with N=1 done as a VPU/XLU lane reduction instead of
    # an MXU matmul: (TB, H) * (1, H) -> sum over H -> (TB, 1)
    o = jnp.sum(h * w2t_ref[...], axis=-1, keepdims=True)
    o_ref[...] = (o + b2_ref[...]).astype(o_ref.dtype)


def _round_up(n, m):
    return (n + m - 1) // m * m


def predictor_forward(x, w1, b1, w2, b2, *, block_rows=512):
    """x: [B, D] float32 -> [B, 1] float32 (matches PyTorch Predictor.forward)."""
    B, D = x.shape
    H = w1.shape[1]          # 64

    # Lane-dense K: zero-pad the feature axis of x (cols) and w1 (rows) to a
    # multiple of 128. Zero padding leaves x @ w1 unchanged.
    Dp = _round_up(D, 128)
    if Dp != D:
        x = jnp.pad(x, ((0, 0), (0, Dp - D)))
        w1 = jnp.pad(w1, ((0, Dp - D), (0, 0)))

    # Batch tiling: TB rows per grid step (multiple of 8), weights resident.
    TB = min(block_rows, _round_up(B, 8))
    Bp = _round_up(B, TB)
    if Bp != B:
        x = jnp.pad(x, ((0, Bp - B), (0, 0)))

    b1_2d = b1.reshape(1, H)
    w2t = w2.reshape(1, H)        # (H, 1) -> row vector (1, H) for VPU reduce
    b2_2d = b2.reshape(1, 1)

    out = pl.pallas_call(
        predictor_kernel,
        out_shape=jax.ShapeDtypeStruct((Bp, 1), x.dtype),
        grid_spec=pl.GridSpec(
            grid=(Bp // TB,),
            in_specs=[
                pl.BlockSpec((TB, Dp), lambda i: (i, 0)),   # x tile strides batch
                pl.BlockSpec((Dp, H), lambda i: (0, 0)),    # w1 resident
                pl.BlockSpec((1, H), lambda i: (0, 0)),     # b1 resident
                pl.BlockSpec((1, H), lambda i: (0, 0)),     # w2^T resident
                pl.BlockSpec((1, 1), lambda i: (0, 0)),     # b2 resident
            ],
            out_specs=pl.BlockSpec((TB, 1), lambda i: (i, 0)),
        ),
        compiler_params=pltpu.CompilerParams(
            dimension_semantics=("parallel",),   # megacore-shard the batch axis
        ),
    )(x, w1, b1_2d, w2t, b2_2d)

    return out[:B]


def init_params(key, input_size, hidden=64, out=1):
    # Deterministic synthetic init (PyTorch-style uniform bounds ~ 1/sqrt(fan_in)).
    k1, k2, k3, k4 = jax.random.split(key, 4)
    bound1 = 1.0 / jnp.sqrt(input_size)
    bound2 = 1.0 / jnp.sqrt(hidden)
    w1 = jax.random.uniform(k1, (input_size, hidden), jnp.float32, -bound1, bound1)
    b1 = jax.random.uniform(k2, (hidden,), jnp.float32, -bound1, bound1)
    w2 = jax.random.uniform(k3, (hidden, out), jnp.float32, -bound2, bound2)
    b2 = jax.random.uniform(k4, (out,), jnp.float32, -bound2, bound2)
    return w1, b1, w2, b2


def _reference(x, w1, b1, w2, b2):
    return jnp.maximum(x @ w1 + b1, 0.0) @ w2 + b2


if __name__ == "__main__":
    key = jax.random.PRNGKey(0)
    kx, kp, kx2 = jax.random.split(key, 3)

    # Small shapes consistent with the module (single-tile path).
    batch, input_size = 8, 32
    x = jax.random.normal(kx, (batch, input_size), jnp.float32)
    w1, b1, w2, b2 = init_params(kp, input_size)

    y = jax.block_until_ready(predictor_forward(x, w1, b1, w2, b2))
    ref = _reference(x, w1, b1, w2, b2)
    assert y.shape == (batch, 1)
    assert jnp.allclose(y, ref, atol=1e-5, rtol=1e-5)

    # Second check exercising the tiled/padded multi-step grid path.
    batch2 = 1040                      # not a multiple of TB -> batch padding
    x2 = jax.random.normal(kx2, (batch2, input_size), jnp.float32)
    y2 = jax.block_until_ready(predictor_forward(x2, w1, b1, w2, b2))
    ref2 = _reference(x2, w1, b1, w2, b2)
    assert y2.shape == (batch2, 1)
    assert jnp.allclose(y2, ref2, atol=1e-5, rtol=1e-5)

    print("KERNEL_OK")
</pallas_src>

<mosaic_0001>
module attributes {stable_mosaic.version = 11 : i64} {
  func.func @predictor_kernel(%arg0: i32, %arg1: memref<8x128xf32, #tpu.memory_space<vmem>>, %arg2: memref<128x64xf32, #tpu.memory_space<vmem>>, %arg3: memref<1x64xf32, #tpu.memory_space<vmem>>, %arg4: memref<1x64xf32, #tpu.memory_space<vmem>>, %arg5: memref<1x1xf32, #tpu.memory_space<vmem>>, %arg6: memref<8x1xf32, #tpu.memory_space<vmem>>) attributes {dimension_semantics = [#tpu.dimension_semantics<parallel>], iteration_bounds = array<i64: 1>, scalar_prefetch = 0 : i64, scratch_operands = 0 : i64, tpu.core_type = #tpu.core_type<tc>, window_params = [{transform_indices = @transform_0, window_bounds = array<i64: 8, 128>}, {pipeline_mode = #tpu.pipeline_mode<synchronous>, transform_indices = @transform_1, window_bounds = array<i64: 128, 64>}, {pipeline_mode = #tpu.pipeline_mode<synchronous>, transform_indices = @transform_2, window_bounds = array<i64: 1, 64>}, {pipeline_mode = #tpu.pipeline_mode<synchronous>, transform_indices = @transform_3, window_bounds = array<i64: 1, 64>}, {pipeline_mode = #tpu.pipeline_mode<synchronous>, transform_indices = @transform_4, window_bounds = array<i64: 1, 1>}, {transform_indices = @transform_5, window_bounds = array<i64: 8, 1>}]} {
    %c0 = arith.constant 0 : index
    %c0_0 = arith.constant 0 : index
    %0 = vector.load %arg1[%c0, %c0_0] : memref<8x128xf32, #tpu.memory_space<vmem>>, vector<8x128xf32>
    %c0_1 = arith.constant 0 : index
    %c0_2 = arith.constant 0 : index
    %1 = vector.load %arg2[%c0_1, %c0_2] : memref<128x64xf32, #tpu.memory_space<vmem>>, vector<128x64xf32>
    %cst = arith.constant dense<0.000000e+00> : vector<8x64xf32>
    %2 = tpu.matmul %0, %1, %cst {dimension_numbers = #tpu.dot_dimension_numbers<[1], [0], [0], [1], [0, 0, 1, 1], [], []>} : vector<8x128xf32>, vector<128x64xf32>, vector<8x64xf32> -> vector<8x64xf32>
    %c0_3 = arith.constant 0 : index
    %c0_4 = arith.constant 0 : index
    %3 = vector.load %arg3[%c0_3, %c0_4] : memref<1x64xf32, #tpu.memory_space<vmem>>, vector<1x64xf32>
    %4 = vector.broadcast %3 : vector<1x64xf32> to vector<8x64xf32>
    %5 = arith.addf %2, %4 : vector<8x64xf32>
    %cst_5 = arith.constant 0.000000e+00 : f32
    %6 = vector.broadcast %cst_5 : f32 to vector<8x64xf32>
    %7 = arith.maximumf %5, %6 : vector<8x64xf32>
    %c0_6 = arith.constant 0 : index
    %c0_7 = arith.constant 0 : index
    %8 = vector.load %arg4[%c0_6, %c0_7] : memref<1x64xf32, #tpu.memory_space<vmem>>, vector<1x64xf32>
    %9 = vector.broadcast %8 : vector<1x64xf32> to vector<8x64xf32>
    %10 = arith.mulf %7, %9 : vector<8x64xf32>
    %cst_8 = arith.constant dense<0.000000e+00> : vector<8xf32>
    %11 = vector.multi_reduction <add>, %10, %cst_8 [1] : vector<8x64xf32> to vector<8xf32>
    %12 = vector.shape_cast %11 : vector<8xf32> to vector<8x1xf32>
    %c0_9 = arith.constant 0 : index
    %c0_10 = arith.constant 0 : index
    %13 = vector.load %arg5[%c0_9, %c0_10] : memref<1x1xf32, #tpu.memory_space<vmem>>, vector<1x1xf32>
    %14 = vector.broadcast %13 : vector<1x1xf32> to vector<8x1xf32>
    %15 = arith.addf %12, %14 : vector<8x1xf32>
    %c0_11 = arith.constant 0 : index
    %c0_12 = arith.constant 0 : index
    %16 = vector.load %arg6[%c0_11, %c0_12] : memref<8x1xf32, #tpu.memory_space<vmem>>, vector<8x1xf32>
    tpu.vector_store %arg6[%c0_11, %c0_12], %15 {strides = array<i32>} : memref<8x1xf32, #tpu.memory_space<vmem>>, vector<8x1xf32>,
    return
  }
  func.func @transform_0(%arg0: i32) -> (i32, i32) {
    %c0_i32 = arith.constant 0 : i32
    %c0_i32_0 = arith.constant 0 : i32
    return %arg0, %c0_i32 : i32, i32
  }
  func.func @transform_1(%arg0: i32) -> (i32, i32) {
    %c0_i32 = arith.constant 0 : i32
    %c0_i32_0 = arith.constant 0 : i32
    %c0_i32_1 = arith.constant 0 : i32
    return %c0_i32, %c0_i32_0 : i32, i32
  }
  func.func @transform_2(%arg0: i32) -> (i32, i32) {
    %c0_i32 = arith.constant 0 : i32
    %c0_i32_0 = arith.constant 0 : i32
    %c0_i32_1 = arith.constant 0 : i32
    return %c0_i32, %c0_i32_0 : i32, i32
  }
  func.func @transform_3(%arg0: i32) -> (i32, i32) {
    %c0_i32 = arith.constant 0 : i32
    %c0_i32_0 = arith.constant 0 : i32
    %c0_i32_1 = arith.constant 0 : i32
    return %c0_i32, %c0_i32_0 : i32, i32
  }
  func.func @transform_4(%arg0: i32) -> (i32, i32) {
    %c0_i32 = arith.constant 0 : i32
    %c0_i32_0 = arith.constant 0 : i32
    %c0_i32_1 = arith.constant 0 : i32
    return %c0_i32, %c0_i32_0 : i32, i32
  }
  func.func @transform_5(%arg0: i32) -> (i32, i32) {
    %c0_i32 = arith.constant 0 : i32
    %c0_i32_0 = arith.constant 0 : i32
    return %arg0, %c0_i32 : i32, i32
  }
}

</mosaic_0001>

<bundles_post_ra>
// kernel: tpu_custom_call.1
= control target key start
LH: loop header
LB: loop body
LE: loop exit
PB: predicated region body
PF: predicated region fallthrough
CT: control target
= control target key end

     0   :  { %v225_v0 = vmov 0.0|0.0   ;;  %vm226_vm0 = vmmov 0   ;;  %v227_v4 = vmov 0.0   ;;  %vm125_vm1 = vcmask 523264   ;;  %s321_s1 = inlined_call_operand.vmem [shape: f32[128,64], index: 1, kind: input, shape index: {}]   ;;  %s322_s0 = inlined_call_operand.vmem [shape: f32[8,128], index: 0, kind: input, shape index: {}]   ;;  %s323_s4 = inlined_call_operand.<no memory space> [shape: f32[1,1], index: 4, kind: input, shape index: {}]   ;;  %s324_s2 = inlined_call_operand.vmem [shape: f32[1,64], index: 2, kind: input, shape index: {}]   ;;  %s325_s3 = inlined_call_operand.vmem [shape: f32[1,64], index: 3, kind: input, shape index: {}]   ;;  %s326_s5 = inlined_call_operand.vmem [shape: f32[8,1], index: 5, kind: output, shape index: {}]  }
   0x1   :  { %198 = vmatprep.subr.bf16.mxu0 %v225_v0  ;;  %v23_v1 = vld [vmem:[%s321_s1] sm:$0xff]  ;;  %v24_v2 = vld [vmem:[%s321_s1 + $0x8] sm:$0xff]  ;;  %v25_v3 = vld [vmem:[%s321_s1 + $0x10] sm:$0xff]  ;;  %195 = vmatprep.mubr.msk.f32.mxu0 %vm226_vm0, %v227_v4  ;;  %v10_v27 = vstv %s323_s4  ;;  %vm137_vm2 = vcmask 7168  }
   0x2   :  { %v199_v5 = vpack.c.bf16 %v24_v2, %v23_v1  ;;  %v26_v6 = vld [vmem:[%s321_s1 + $0x18] sm:$0xff]  ;;  %v27_v8 = vld [vmem:[%s321_s1 + $0x20] sm:$0xff]  ;;  %v28_v9 = vld [vmem:[%s321_s1 + $0x28] sm:$0xff]  ;;  %11 = vst [vmem:[#allocation2] sm:$0x1] %v10_v27 }
   0x3   :  { %v202_v7 = vpack.c.bf16 %v26_v6, %v25_v3  ;;  %v205_v10 = vpack.c.bf16 %v28_v9, %v27_v8  ;;  %v29_v11 = vld [vmem:[%s321_s1 + $0x30] sm:$0xff]  ;;  %v30_v12 = vld [vmem:[%s321_s1 + $0x38] sm:$0xff]  ;;  %v31_v14 = vld [vmem:[%s321_s1 + $0x40] sm:$0xff] }
   0x4   :  { %200 = vmatpush3.bf16.msra.mxu0 %v199_v5  ;;  %v208_v13 = vpack.c.bf16 %v30_v12, %v29_v11  ;;  %v32_v15 = vld [vmem:[%s321_s1 + $0x48] sm:$0xff]  ;;  %v33_v17 = vld [vmem:[%s321_s1 + $0x50] sm:$0xff]  ;;  %v34_v18 = vld [vmem:[%s321_s1 + $0x58] sm:$0xff] }
   0x5   :  { %201 = vmatprep.subr.bf16.mxu0 %v225_v0  ;;  %v211_v16 = vpack.c.bf16 %v32_v15, %v31_v14  ;;  %v214_v19 = vpack.c.bf16 %v34_v18, %v33_v17  ;;  %v35_v20 = vld [vmem:[%s321_s1 + $0x60] sm:$0xff]  ;;  %v36_v21 = vld [vmem:[%s321_s1 + $0x68] sm:$0xff]  ;;  %v37_v23 = vld [vmem:[%s321_s1 + $0x70] sm:$0xff] }
   0x6   :  { %v217_v22 = vpack.c.bf16 %v36_v21, %v35_v20  ;;  %v38_v24 = vld [vmem:[%s321_s1 + $0x78] sm:$0xff]  ;;  %v22_v26 = vld [vmem:[%s322_s0] sm:$0xff] }
   0x7   :  { %v220_v25 = vpack.c.bf16 %v38_v24, %v37_v23  ;;  %v143_v28 = vld [vmem:[%s324_s2] ss:$0 sm:$0xff] }
   0x8   :  { %203 = vmatpush3.bf16.msra.mxu0 %v202_v7  ;;  %v144_v32 = vld [vmem:[%s325_s3] ss:$0 sm:$0xff] }
   0x9   :  { %204 = vmatprep.subr.bf16.mxu0 %v225_v0  ;;  %v145_v36 = vld [vmem:[#allocation2] ss:$0 sm:$0xff] }
   0xc   :  { %206 = vmatpush3.bf16.msra.mxu0 %v205_v10 }
   0xd   :  { %207 = vmatprep.subr.bf16.mxu0 %v225_v0 }
  0x10   :  { %209 = vmatpush3.bf16.msra.mxu0 %v208_v13 }
  0x11   :  { %210 = vmatprep.subr.bf16.mxu0 %v225_v0 }
  0x14   :  { %212 = vmatpush3.bf16.msra.mxu0 %v211_v16 }
  0x15   :  { %213 = vmatprep.subr.bf16.mxu0 %v225_v0 }
  0x18   :  { %215 = vmatpush3.bf16.msra.mxu0 %v214_v19 }
  0x19   :  { %216 = vmatprep.subr.bf16.mxu0 %v225_v0 }
  0x1c   :  { %218 = vmatpush3.bf16.msra.mxu0 %v217_v22 }
  0x1d   :  { %219 = vmatprep.subr.bf16.mxu0 %v225_v0 }
  0x20   :  { %221 = vmatpush3.bf16.msra.mxu0 %v220_v25 }
  0x23   :  { %196 = vmatmul.mubr.f32.vlgmr.msra.gmra.mrb[0].mxu0 %v22_v26 }
  0xf6   :  { %v112_v29 = vpop.f32.mrb[0].mxu0 }
  0xf7   :  { %v113_v30 = vadd.f32 %v143_v28, %v112_v29  ;;  %v197_v31 = vpop.f32.mrb[1].mxu0 }
  0xf9   :  { %v116_v33 = vmax.f32 %v113_v30, 0.0 }
  0xfb   :  { %v124_v34 = vmul.f32 %v144_v32, %v116_v33 }
  0xfd   :  { %v126_v35 = vsel %vm125_vm1, %v124_v34, 0.0 }
  0xfe   :  { %127 = vadd.xlane.f32.xlu0 %v126_v35 }
 0x18b   :  { %v128_v37 = vpop.xlane.xlu0 %127 }
 0x18c   :  { %v136_v38 = vadd.f32 %v145_v36, %v128_v37 }
 0x18e   :  { %138 = vst.msk [vmem:[%s326_s5] sm:$0xff] %vm137_vm2, %v136_v38 }

</bundles_post_ra>
